<compile_context>
chip_gen: v7x
topology: tpu7x:2x2x1
jax: 0.10.0
libtpu: 0.0.40
codegen_flags: <defaults>
</compile_context>

<pallas_src>
import numpy as np
import jax
import jax.numpy as jnp
from jax import lax
from jax.experimental import pallas as pl
from jax.experimental.pallas import tpu as pltpu


# ----------------------------------------------------------------------------
# Kernel: out(t_hw, E) = x(C, t_hw)^T @ w(C, E) + bias(1, E)
# ----------------------------------------------------------------------------
def _mlp_proj_kernel(x_ref, w_ref, b_ref, o_ref):
    # x_ref: (C, t_hw) f32 -- channels on sublanes, spatial positions on lanes
    # w_ref: (C, E)    bf16 (resident in VMEM across the whole grid)
    # In-kernel cast: rides the VPU slot (slack under the MXU), avoids an
    # extra wrapper-side HBM pass over x.
    x = x_ref[...].astype(w_ref.dtype)
    # Contract over C (dim 0 of both) == transposed-LHS matmul on the MXU.
    acc = lax.dot_general(
        x,
        w_ref[...],
        dimension_numbers=(((0,), (0,)), ((), ())),
        preferred_element_type=jnp.float32,
    )                                      # (t_hw, E) f32 accumulator
    acc = acc + b_ref[...]                 # (1, E) f32 bias, broadcast over rows
    o_ref[...] = acc.astype(o_ref.dtype)


def _pick_tile(dim, target, quantum):
    """Full dim if it fits the target, else the largest multiple of `quantum`
    <= target (keeps block edges (8,128)-legal, output lane-dense, and tiles
    MXU-aligned)."""
    if dim <= target:
        return dim
    return max(quantum, (target // quantum) * quantum)


def _vmem_limit_bytes(C, t_hw, E, x_itemsize, w_itemsize, out_itemsize):
    """Scoped-VMEM budget for the double-buffered per-step footprint."""
    x_tile = C * t_hw * x_itemsize
    w_tile = C * E * w_itemsize
    b_tile = E * 4
    o_tile = t_hw * E * out_itemsize
    need = 2 * (x_tile + w_tile + b_tile + o_tile)   # worst case: all double-buffered
    need += 2 << 20                                  # headroom / compiler scratch
    # Floor at 16 MiB (harmless), cap at the smallest physical VMEM per TC (v7x 64 MiB).
    return int(min(max(need, 16 << 20), 64 << 20))


# ----------------------------------------------------------------------------
# Wrapper: PyTorch-style NCHW input -> (B, H*W, E) output
# ----------------------------------------------------------------------------
def mlp_forward(x_nchw, w, b, *, t_hw=512,
                compute_dtype=jnp.bfloat16, out_dtype=jnp.float32):
    """SegFormer MLP: x.flatten(2).transpose(1, 2) @ w + b.

    x_nchw: (B, C, H, W);  w: (C, E);  b: (E,)  ->  (B, H*W, E)
    """
    B, C, H, W = x_nchw.shape
    HW = H * W
    Cw, E = w.shape
    assert Cw == C, (Cw, C)

    # Row tile: multiples of 256 (MXU-aligned on v6e/v7x; fine on v5e too).
    t_hw = _pick_tile(HW, t_hw, quantum=256)
    n_hw = pl.cdiv(HW, t_hw)

    # Megacore occupancy: avoid a 1-step grid on v7x (2 TCs) for small calls.
    if B * n_hw < 2 and HW >= 256:
        t_hw = max(128, (pl.cdiv(HW, 2) // 128) * 128)
        n_hw = pl.cdiv(HW, t_hw)

    # Contiguous reshape only (no relayout); x stays f32 — cast happens in-kernel.
    x3 = x_nchw.reshape(B, C, HW)
    wc = w.astype(compute_dtype)
    b2 = b.reshape(1, E).astype(jnp.float32)

    grid = (B, n_hw)

    x_itemsize = x3.dtype.itemsize
    w_itemsize = wc.dtype.itemsize
    out_itemsize = jnp.dtype(out_dtype).itemsize

    cost = pl.CostEstimate(
        flops=2 * B * HW * C * E,
        transcendentals=0,
        bytes_accessed=(B * C * HW * x_itemsize
                        + C * E * w_itemsize
                        + E * 4
                        + B * HW * E * out_itemsize),
    )

    return pl.pallas_call(
        _mlp_proj_kernel,
        out_shape=jax.ShapeDtypeStruct((B, HW, E), out_dtype),
        grid_spec=pltpu.PrefetchScalarGridSpec(
            num_scalar_prefetch=0,
            grid=grid,
            in_specs=[
                # x slab: batch squeezed, full C (contraction dim), tiled HW.
                # (If xprof ever shows exposed DMA on this stream, add
                #  pipeline_mode=pl.Buffered(3) here.)
                pl.BlockSpec((None, C, t_hw), lambda nb, i: (nb, 0, i)),
                # weight: full (C, E), constant index_map -> stays resident in VMEM.
                pl.BlockSpec((C, E), lambda nb, i: (0, 0)),
                # bias: full (1, E), constant index_map -> resident.
                pl.BlockSpec((1, E), lambda nb, i: (0, 0)),
            ],
            out_specs=pl.BlockSpec((None, t_hw, E), lambda nb, i: (nb, i, 0)),
        ),
        compiler_params=pltpu.CompilerParams(
            dimension_semantics=("parallel", "parallel"),
            vmem_limit_bytes=_vmem_limit_bytes(
                C, t_hw, E, x_itemsize, w_itemsize, out_itemsize),
        ),
        cost_estimate=cost,
    )(x3, wc, b2)


# ----------------------------------------------------------------------------
# Demo / self-check
# ----------------------------------------------------------------------------
if __name__ == "__main__":
    key = jax.random.PRNGKey(0)
    B, C, H, W = 2, 64, 16, 16     # small, lane-friendly demo shapes
    E = 128

    kx, kw, kb = jax.random.split(key, 3)
    x = jax.random.normal(kx, (B, C, H, W), jnp.float32)
    bound = 1.0 / np.sqrt(C)       # nn.Linear default uniform init
    w = jax.random.uniform(kw, (C, E), jnp.float32, -bound, bound)
    b = jax.random.uniform(kb, (E,), jnp.float32, -bound, bound)

    out = mlp_forward(x, w, b)
    out = jax.block_until_ready(out)
    assert out.shape == (B, H * W, E), out.shape

    # Reference with the same bf16-quantized operands (isolates kernel-logic
    # error from the intentional in-kernel bf16 cast of the MXU inputs).
    xr = x.reshape(B, C, H * W).astype(jnp.bfloat16).astype(jnp.float32)
    wr = w.astype(jnp.bfloat16).astype(jnp.float32)
    ref = jnp.einsum("bcm,ce->bme", xr, wr) + b[None, None, :]
    err = float(jnp.max(jnp.abs(out - ref)))
    assert jnp.allclose(out, ref, rtol=2e-2, atol=2e-2), err

    print("KERNEL_OK")
</pallas_src>

<mosaic_0001>
module attributes {stable_mosaic.version = 11 : i64} {
  func.func @_mlp_proj_kernel(%arg0: i32, %arg1: i32, %arg2: memref<1x64x256xf32, #tpu.memory_space<vmem>>, %arg3: memref<64x128xbf16, #tpu.memory_space<vmem>>, %arg4: memref<1x128xf32, #tpu.memory_space<vmem>>, %arg5: memref<1x256x128xf32, #tpu.memory_space<vmem>>) attributes {dimension_semantics = [#tpu.dimension_semantics<parallel>, #tpu.dimension_semantics<parallel>], iteration_bounds = array<i64: 2, 1>, scalar_prefetch = 0 : i64, scratch_operands = 0 : i64, tpu.core_type = #tpu.core_type<tc>, window_params = [{transform_indices = @transform_0, window_bounds = array<i64: 1, 64, 256>}, {pipeline_mode = #tpu.pipeline_mode<synchronous>, transform_indices = @transform_1, window_bounds = array<i64: 64, 128>}, {pipeline_mode = #tpu.pipeline_mode<synchronous>, transform_indices = @transform_2, window_bounds = array<i64: 1, 128>}, {transform_indices = @transform_3, window_bounds = array<i64: 1, 256, 128>}]} {
    %c0 = arith.constant 0 : index
    %c0_0 = arith.constant 0 : index
    %c0_1 = arith.constant 0 : index
    %0 = vector.load %arg2[%c0, %c0_0, %c0_1] : memref<1x64x256xf32, #tpu.memory_space<vmem>>, vector<1x64x256xf32>
    %1 = vector.shape_cast %0 : vector<1x64x256xf32> to vector<64x256xf32>
    %2 = arith.truncf %1 : vector<64x256xf32> to vector<64x256xbf16>
    %c0_2 = arith.constant 0 : index
    %c0_3 = arith.constant 0 : index
    %3 = vector.load %arg3[%c0_2, %c0_3] : memref<64x128xbf16, #tpu.memory_space<vmem>>, vector<64x128xbf16>
    %cst = arith.constant dense<0.000000e+00> : vector<256x128xf32>
    %4 = tpu.matmul %2, %3, %cst {dimension_numbers = #tpu.dot_dimension_numbers<[0], [0], [1], [1], [0, 1, 1, 1], [], []>} : vector<64x256xbf16>, vector<64x128xbf16>, vector<256x128xf32> -> vector<256x128xf32>
    %c0_4 = arith.constant 0 : index
    %c0_5 = arith.constant 0 : index
    %5 = vector.load %arg4[%c0_4, %c0_5] : memref<1x128xf32, #tpu.memory_space<vmem>>, vector<1x128xf32>
    %6 = vector.broadcast %5 : vector<1x128xf32> to vector<256x128xf32>
    %7 = arith.addf %4, %6 : vector<256x128xf32>
    %c0_6 = arith.constant 0 : index
    %c0_7 = arith.constant 0 : index
    %c0_8 = arith.constant 0 : index
    %8 = vector.load %arg5[%c0_6, %c0_7, %c0_8] : memref<1x256x128xf32, #tpu.memory_space<vmem>>, vector<1x256x128xf32>
    %9 = vector.shape_cast %8 : vector<1x256x128xf32> to vector<256x128xf32>
    %10 = vector.shape_cast %7 : vector<256x128xf32> to vector<1x256x128xf32>
    tpu.vector_store %arg5[%c0_6, %c0_7, %c0_8], %10 {strides = array<i32>} : memref<1x256x128xf32, #tpu.memory_space<vmem>>, vector<1x256x128xf32>,
    return
  }
  func.func @transform_0(%arg0: i32, %arg1: i32) -> (i32, i32, i32) {
    %c0_i32 = arith.constant 0 : i32
    %c0_i32_0 = arith.constant 0 : i32
    return %arg0, %c0_i32, %arg1 : i32, i32, i32
  }
  func.func @transform_1(%arg0: i32, %arg1: i32) -> (i32, i32) {
    %c0_i32 = arith.constant 0 : i32
    %c0_i32_0 = arith.constant 0 : i32
    %c0_i32_1 = arith.constant 0 : i32
    return %c0_i32, %c0_i32_0 : i32, i32
  }
  func.func @transform_2(%arg0: i32, %arg1: i32) -> (i32, i32) {
    %c0_i32 = arith.constant 0 : i32
    %c0_i32_0 = arith.constant 0 : i32
    %c0_i32_1 = arith.constant 0 : i32
    return %c0_i32, %c0_i32_0 : i32, i32
  }
  func.func @transform_3(%arg0: i32, %arg1: i32) -> (i32, i32, i32) {
    %c0_i32 = arith.constant 0 : i32
    %c0_i32_0 = arith.constant 0 : i32
    return %arg0, %arg1, %c0_i32 : i32, i32, i32
  }
}

</mosaic_0001>

<bundles_post_ra>
// kernel: tpu_custom_call.1
= control target key start
LH: loop header
LB: loop body
LE: loop exit
PB: predicated region body
PF: predicated region fallthrough
CT: control target
= control target key end

     0   :  { %8 = vsyncpa [#allocation3], 0  ;;  %s1368_s0 = inlined_call_operand.hbm [shape: f32[2,64,256], index: 0, kind: input, shape index: {}]   ;;  %s1369_s1 = inlined_call_operand.hbm [shape: bf16[64,128], index: 1, kind: input, shape index: {}]   ;;  %s1370_s2 = inlined_call_operand.vmem [shape: f32[1,128], index: 2, kind: input, shape index: {}]   ;;  %s1371_s3 = inlined_call_operand.hbm [shape: f32[2,256,128], index: 3, kind: output, shape index: {}]  }
   0x1   :  { %10 = vsyncpa [#allocation3 + $0x1], 0 }
   0x2   :  { %11 = vsyncpa [#allocation6], 0 }
   0x3   :  { %12 = vsyncpa [#allocation4], 0 }
   0x4   :  { %14 = vsyncpa [#allocation4 + $0x1], 0  ;;  %s1042_s12 = smov 0   ;;  %s1044_s13 = smov 0  }
   0x5   :  { %s1046_s14 = smov 0   ;;  %s1048_s15 = smov 0  }
   0x6   :  { %s1050_s16 = smov 0   ;;  %s1052_s17 = smov 0  }
   0x7 LB: > { %s675_s18 = sadd.s32 4294967295, %s1011_s17   ;;  %s676_s19 = sadd.s32 4294967294, %s1011_s17   ;;  %s1011_s17 = sphi %s1052_s17, %s20_s17   ;;  %s1007_s16 = sphi %s1050_s16, %s1395_s16   ;;  %s1003_s15 = sphi %s1048_s15, %s1394_s15   ;;  %s999_s14 = sphi %s1046_s14, %s1393_s14   ;;  %s995_s13 = sphi %s1044_s13, %s1392_s13   ;;  %s991_s12 = sphi %s1042_s12, %s1391_s12  }
   0x8   : > { %p54_p0 = scmp.ne.s32.totalorder %s995_s13, %s991_s12  ;;  %p1076_p1 = scmp.eq.s32.totalorder %s675_s18, 0 }
   0x9   : > { %p1080_p2 = scmp.eq.s32.totalorder %s675_s18, 1  ;;  %p128_p3 = scmp.eq.s32.totalorder %s676_s19, 1 }
   0xa   : > { %s1376_s20 = scalar_select %p1076_p1, 1, 0 }
   0xb   : > { %s1377_s21 = scalar_select %p1080_p2, 1, 0 }
   0xc   : > { %p1086_p4 = por %p1076_p1, %p54_p0  ;;  %p677_p5 = scmp.ge.s32.totalorder %s1011_s17, 1 }
   0xd   : > { %p1091_p6 = por %p128_p3, %p54_p0  ;;  %p135_p7 = scmp.lt.s32.totalorder %s1011_s17, 3 }
   0xe   : > { %s1378_s22 = scalar_select %p1086_p4, 1, 0 }
   0xf   : > { %s1379_s23 = scalar_select %p1091_p6, 1, 0 }
  0x10   : > { %p1096_p8 = pnand %p677_p5, %p135_p7  ;;  %s1013_s25 = smov [#allocation5]  }
  0x11   : > { %s147_s26 = sshll.u32 %s1013_s25, 4  ;;  %s32_s28 = sadd.s32 1, %s1007_s16  ;;  %s148_s26 = int_to_ptr.vmem [resolvable:$true] %s147_s26 }
  0x12   : > { %s1380_s24 = scalar_select %p1096_p8, 1, 0 }
  0x13   : > { %p791_p9 = pneg %p1096_p8  ;;  %s867_s4 = scalar_lea.hbm %s1369_s1, 512 }
  0x14   : > { %p868_p12 = scmp.ne.s32.totalorder %s1369_s1, %s867_s4  ;;  %p874_p5 = scmp.lt.u32.totalorder %s867_s4, %s1369_s1 }
  0x15   : > { %p1105_p11 = pnand %p791_p9, %p1076_p1 }
  0x17   : > { %p869_p13 = pneg %p1105_p11 }
  0x19   : > { %p870_p0 = pnand %p869_p13, %p868_p12 }
  0x1b   : > { %p871_p3 = pneg %p870_p0 }
  0x1d   : > { %p876_p7 = pnand %p874_p5, %p871_p3 }
  0x1f   : > { %879 = shalt.err (!%p876_p7)
}
  0x20   : > { %s880_s9 = scalar_lea.vmem %s148_s26, 512  ;;  %p888_p1 = scmp.lt.s32.totalorder %s148_s26, %s148_s26 }
  0x21   : > { %p881_p9 = scmp.ne.s32.totalorder %s148_s26, %s880_s9  ;;  %p889_p4 = scmp.lt.s32.totalorder %s880_s9, %s880_s9 }
  0x23   : > { %p883_p10 = pnand %p881_p9, %p869_p13  ;;  %p890_p8 = por %p889_p4, %p888_p1 }
  0x25   : > { %p884_p6 = pneg %p883_p10 }
  0x27   : > { %p891_p2 = pnand %p890_p8, %p884_p6 }
  0x29   : > { %894 = shalt.err (!%p891_p2)
}
  0x2a   : > { %s1014_s10 = smov 64   ;;  %s1015_s11 = smov 4  }
  0x2b   : > { %794 = dma.hbm_to_vmem [thread:$0]  (!%p1105_p11), %s1369_s1, 512, %s148_s26, [#allocation6], %s1014_s10, %s1014_s10, %s1015_s11  }
  0x2c   : > { %p34_p1 = scmp.ge.s32.totalorder %s32_s28, 2  ;;  %s41_s25 = sadd.s32 1, %s999_s14 }
  0x2d   : > { %p48_p2 = scmp.ne.s32.totalorder %s999_s14, %s995_s13  ;;  %p49_p4 = scmp.eq.s32.totalorder %s1011_s17, 0 }
  0x2e   : > { %s1397_s28 = smov (%p34_p1, %s32_s28), 0  ;;  %p1383_p8 = scmp.ne.s32.totalorder %s1377_s21, 0 }
  0x2f   : > { %p1132_p6 = por %p49_p4, %p48_p2  ;;  %s36_s27 = ssub.s32 %s1007_s16, %s1397_s28 }
  0x30   : > { %p1138_p10 = por %p1383_p8, %p48_p2  ;;  %p804_p12 = scmp.lt.s32.totalorder %s1011_s17, 2 }
  0x31   : > { %p39_p11 = scmp.eq.s32.totalorder %s36_s27, 0  ;;  %s164_s26 = sand.u32 1, %s999_s14  }
  0x32   : > { %s680_s4 = sshll.u32 %s164_s26, 7  ;;  %s713_s6 = sshll.u32 %s1007_s16, 11 }
  0x33   : > { %s1147_s5 = scalar_select %p39_p11, %s999_s14, %s41_s25  }
  0x34   : > { %s1153_s9 = scalar_lea.hbm %s1368_s0, %s713_s6  ;;  %s168_s21 = scalar_lea.vmem [#allocation2], %s680_s4 }
  0x35   : > { %s177_s10 = sshll.u32 %s168_s21, 4  ;;  %p1159_p13 = pnand %p804_p12, %p1132_p6  ;;  %s1155_s10 = int_to_ptr.vmem [resolvable:$true] %s177_s10 }
  0x36   : > { %s1163_s18 = scalar_lea.sflag [#allocation3], %s164_s26  ;;  %s895_s19 = scalar_lea.hbm %s1153_s9, 2048 }
  0x37   : > { %p896_p0 = scmp.ne.s32.totalorder %s1153_s9, %s895_s19  ;;  %p897_p3 = pneg %p1159_p13 }
  0x38   : > { %s900_s29 = scalar_lea.hbm %s1368_s0, 4096  ;;  %p901_p9 = scmp.lt.u32.totalorder %s1153_s9, %s1368_s0 }
  0x39   : > { %p898_p5 = pnand %p897_p3, %p896_p0  ;;  %p902_p1 = scmp.lt.u32.totalorder %s900_s29, %s895_s19 }
  0x3a   : > { %p904_p4 = scmp.lt.u32.totalorder %s895_s19, %s1153_s9 }
  0x3b   : > { %p899_p7 = pneg %p898_p5  ;;  %p903_p2 = por %p902_p1, %p901_p9 }
  0x3d   : > { %p905_p6 = por %p904_p4, %p903_p2 }
  0x3f   : > { %p906_p8 = pnand %p905_p6, %p899_p7 }
  0x41   : > { %909 = shalt.err (!%p906_p8)
}
  0x42   : > { %s910_s26 = scalar_lea.vmem %s1155_s10, 2048  ;;  %s1016_s7 = smov [#allocation2]  }
  0x43   : > { %p911_p12 = scmp.ne.s32.totalorder %s1155_s10, %s910_s26  ;;  %s915_s8 = sshll.u32 %s1016_s7, 4  ;;  %s916_s8 = int_to_ptr.vmem [resolvable:$false] %s915_s8 }
  0x44   : > { %s917_s21 = scalar_lea.vmem %s916_s8, 4096  ;;  %p918_p5 = scmp.lt.s32.totalorder %s1155_s10, %s916_s8 }
  0x45   : > { %p913_p11 = pnand %p911_p12, %p897_p3  ;;  %p919_p9 = scmp.lt.s32.totalorder %s917_s21, %s910_s26 }
  0x47   : > { %p914_p0 = pneg %p913_p11  ;;  %p920_p1 = por %p919_p9, %p918_p5 }
  0x49   : > { %p921_p2 = pnand %p920_p1, %p914_p0 }
  0x4b   : > { %924 = shalt.err (!%p921_p2)
}
  0x4c   : > { %s1017_s19 = smov 256   ;;  %s1018_s25 = smov 16  }
  0x4d   : > { %798 = dma.hbm_to_vmem [thread:$0]  (!%p1159_p13), %s1153_s9, 2048, %s1155_s10, %s1163_s18, %s1017_s19, %s1017_s19, %s1018_s25  }
  0x4e   : > { %p1386_p3 = scmp.ne.s32.totalorder %s1380_s24, 0 }
  0x4f   : > { %s1194_s27 = sand.u32 (!%p1386_p3), 1, %s995_s13   ;;  %p1387_p7 = scmp.ne.s32.totalorder (!%p1386_p3), %s1378_s22, 0 }
  0x50   : > { %189 = sbr.rel (%p1386_p3) target bundleno = 458 (0x1ca), region = 32  ;;  %s684_s29 = sshll.u32 (!%p1386_p3), %s1194_s27, 7 }
  0x51   : > { %s192_s4 = scalar_lea.sflag (!%p1386_p3), [#allocation3], %s1194_s27  ;;  %s1198_s6 = scalar_lea.vmem (!%p1386_p3), [#allocation2], %s684_s29 }
  0x57   : > { %978 = dma.done.wait (%p1387_p7), %s192_s4, 2048  }
  0x58   : > { %980 = vsyncadd (%p1387_p7), %s192_s4, 4294965248  ;;  %p1388_p13 = scmp.ne.s32.totalorder %s1376_s20, 0 }
  0x5a   : > { %982 = dma.done.wait (%p1388_p13), [#allocation6], 512  }
  0x5b   : > { %984 = vsyncadd (%p1388_p13), [#allocation6], 4294966784  ;;  %v226_v0 = vld [vmem:[%s1198_s6 + $0x8] sm:$0xff]  ;;  %v228_v1 = vld [vmem:[%s1198_s6 + $0x18] sm:$0xff]  ;;  %vm320_vm0 = vcmask 523264   ;;  %s686_s20 = sshll.u32 %s1194_s27, 8 }
  0x5c   : > { %v225_v2 = vld [vmem:[%s1198_s6] sm:$0xff]  ;;  %v242_v3 = vpack.c.bf16 %v228_v1, %v226_v0  ;;  %v227_v4 = vld [vmem:[%s1198_s6 + $0x10] sm:$0xff]  ;;  %v230_v5 = vld [vmem:[%s1198_s6 + $0x28] sm:$0xff]  ;;  %s1249_s9 = scalar_lea.vmem [#allocation7], %s686_s20  ;;  %s714_s10 = sshll.u32 %s1003_s15, 12 }
  0x5d   : > { %v232_v6 = vld [vmem:[%s1198_s6 + $0x38] sm:$0xff]  ;;  %v241_v7 = vpack.c.bf16 %v227_v4, %v225_v2  ;;  %v229_v8 = vld [vmem:[%s1198_s6 + $0x20] sm:$0xff]  ;;  %v231_v9 = vld [vmem:[%s1198_s6 + $0x30] sm:$0xff]  ;;  %s578_s11 = sshll.u32 %s1249_s9, 4  ;;  %s1311_s26 = scalar_lea.hbm %s1371_s3, %s714_s10  ;;  %s1313_s11 = int_to_ptr.vmem [resolvable:$true] %s578_s11 }
  0x5e   : > { %280 = vxpose.xlu1.c.b16.start [1/4] (short) %v242_v3, 128  ;;  %v244_v10 = vpack.c.bf16 %v232_v6, %v230_v5  ;;  %v243_v11 = vpack.c.bf16 %v231_v9, %v229_v8  ;;  %v234_v12 = vld [vmem:[%s1198_s6 + $0x48] sm:$0xff]  ;;  %v236_v13 = vld [vmem:[%s1198_s6 + $0x58] sm:$0xff]  ;;  %v233_v14 = vld [vmem:[%s1198_s6 + $0x40] sm:$0xff]  ;;  %s563_s7 = scalar_lea.sflag [#allocation4], %s1194_s27  ;;  %s925_s8 = scalar_lea.vmem %s1313_s11, 4096 }
  0x5f   : > { %264 = vxpose.xlu0.c.b16.start [1/4] (short) %v241_v7, 128  ;;  %v235_v15 = vld [vmem:[%s1198_s6 + $0x50] sm:$0xff]  ;;  %v238_v16 = vld [vmem:[%s1198_s6 + $0x68] sm:$0xff]  ;;  %v863_v17 = vld [vmem:[#allocation5] sm:$0xff]   ;;  %v246_v18 = vpack.c.bf16 %v236_v13, %v234_v12  ;;  %p926_p4 = scmp.ne.s32.totalorder %s1313_s11, %s925_s8  ;;  %s1019_s21 = smov [#allocation7]  }
  0x60   : > { %v864_v19 = vld [vmem:[#allocation5 + $0x8] sm:$0xff]   ;;  %v245_v20 = vpack.c.bf16 %v235_v15, %v233_v14  ;;  %v240_v21 = vld [vmem:[%s1198_s6 + $0x78] sm:$0xff]  ;;  %735 = vmatprep.subr.bf16.mxu0 %v863_v17  ;;  %v237_v22 = vld [vmem:[%s1198_s6 + $0x60] sm:$0xff]  ;;  %775 = vmatprep.subr.bf16.mxu1 %v863_v17  ;;  %s929_s19 = sshll.u32 %s1019_s21, 4  ;;  %s930_s19 = int_to_ptr.vmem [resolvable:$false] %s929_s19 }
  0x61   : > { %v239_v23 = vld [vmem:[%s1198_s6 + $0x70] sm:$0xff]  ;;  %736 = vmatpush3.bf16.msra.mxu0 %v863_v17  ;;  %779 = vmatpush3.bf16.msra.mxu1 %v863_v17  ;;  %v248_v25 = vpack.c.bf16 %v240_v21, %v238_v16  ;;  %v866_v27 = vld [vmem:[#allocation5 + $0x18] sm:$0xff]   ;;  %v1244_v44 = vld [vmem:[%s1370_s2] ss:$0 sm:$0xff]  ;;  %p927_p6 = pnand %p926_p4, %p1138_p10  ;;  %s931_s25 = scalar_lea.vmem %s930_s19, 8192 }
  0x62   : > { %281 = vxpose.xlu1.c.b16.cont [2/4] (short) %v244_v10, 128  ;;  %737 = vmatprep.subr.bf16.mxu0 %v864_v19  ;;  %v865_v24 = vld [vmem:[#allocation5 + $0x10] sm:$0xff]   ;;  %v247_v26 = vpack.c.bf16 %v239_v23, %v237_v22  ;;  %p932_p12 = scmp.lt.s32.totalorder %s1313_s11, %s930_s19  ;;  %p933_p11 = scmp.lt.s32.totalorder %s931_s25, %s925_s8 }
  0x63   : > { %265 = vxpose.xlu0.c.b16.cont [2/4] (short) %v243_v11, 128  ;;  %776 = vmatprep.subr.bf16.mxu1 %v864_v19  ;;  %p928_p8 = pneg %p927_p6 }
  0x64   : > { %p934_p0 = por %p933_p11, %p932_p12 }
  0x65   : > { %738 = vmatpush3.bf16.msra.mxu0 %v864_v19  ;;  %780 = vmatpush3.bf16.msra.mxu1 %v864_v19 }
  0x66   : > { %282 = vxpose.xlu1.c.b16.cont [3/4] (short) %v246_v18, 128  ;;  %739 = vmatprep.subr.bf16.mxu0 %v865_v24  ;;  %p935_p5 = pnand %p934_p0, %p928_p8 }
  0x67   : > { %266 = vxpose.xlu0.c.b16.cont [3/4] (short) %v245_v20, 128  ;;  %777 = vmatprep.subr.bf16.mxu1 %v865_v24 }
  0x69   : > { %740 = vmatpush3.bf16.msra.mxu0 %v865_v24  ;;  %781 = vmatpush3.bf16.msra.mxu1 %v865_v24 }
  0x6a   : > { %283 = vxpose.xlu1.c.b16.end [4/4] (short) %v248_v25, 128  ;;  %741 = vmatprep.subr.bf16.mxu0 %v866_v27 }
  0x6b   : > { %267 = vxpose.xlu0.c.b16.end [4/4] (short) %v247_v26, 128  ;;  %778 = vmatprep.subr.bf16.mxu1 %v866_v27 }
  0x6d   : > { %742 = vmatpush3.bf16.msra.mxu0 %v866_v27  ;;  %782 = vmatpush3.bf16.msra.mxu1 %v866_v27 }
  0xc4   : > { %v288_v28 = vpop.trf.xlu1 }
  0xc5   : > { %v272_v29 = vpop.trf.xlu0  ;;  %759 = vmatprep.mubr.msk.bf16.mxu1 %vm320_vm0, %v288_v28 }
  0xc6   : > { %743 = vmatprep.mubr.msk.bf16.mxu0 %vm320_vm0, %v272_v29 }
  0xc8   : > { %v289_v30 = vpop.trf.xlu1 }
  0xc9   : > { %v273_v31 = vpop.trf.xlu0  ;;  %760 = vmatmul.mubr.msk.bf16.vlgmr.msra.gmra.mrb[0].mxu1 %vm320_vm0, %v289_v30 }
  0xca   : > { %744 = vmatmul.mubr.msk.bf16.vlgmr.msra.gmra.mrb[0].mxu0 %vm320_vm0, %v273_v31 }
  0xcc   : > { %v290_v32 = vpop.trf.xlu1 }
  0xcd   : > { %v274_v33 = vpop.trf.xlu0  ;;  %763 = vmatprep.mubr.msk.bf16.mxu1 %vm320_vm0, %v290_v32 }
  0xce   : > { %747 = vmatprep.mubr.msk.bf16.mxu0 %vm320_vm0, %v274_v33 }
  0xd0   : > { %v291_v34 = vpop.trf.xlu1 }
  0xd1   : > { %v275_v35 = vpop.trf.xlu0  ;;  %764 = vmatmul.mubr.msk.bf16.gmra.mrb[4].mxu1 %vm320_vm0, %v291_v34 }
  0xd2   : > { %748 = vmatmul.mubr.msk.bf16.gmra.mrb[4].mxu0 %vm320_vm0, %v275_v35 }
  0xd4   : > { %v292_v36 = vpop.trf.xlu1 }
  0xd5   : > { %v276_v37 = vpop.trf.xlu0  ;;  %767 = vmatprep.mubr.msk.bf16.mxu1 %vm320_vm0, %v292_v36 }
  0xd6   : > { %751 = vmatprep.mubr.msk.bf16.mxu0 %vm320_vm0, %v276_v37 }
  0xd8   : > { %v293_v38 = vpop.trf.xlu1 }
  0xd9   : > { %v277_v39 = vpop.trf.xlu0  ;;  %768 = vmatmul.mubr.msk.bf16.gmra.mrb[8].mxu1 %vm320_vm0, %v293_v38 }
  0xda   : > { %752 = vmatmul.mubr.msk.bf16.gmra.mrb[8].mxu0 %vm320_vm0, %v277_v39 }
  0xdc   : > { %v294_v40 = vpop.trf.xlu1 }
  0xdd   : > { %v278_v41 = vpop.trf.xlu0  ;;  %771 = vmatprep.mubr.msk.bf16.mxu1 %vm320_vm0, %v294_v40 }
  0xde   : > { %755 = vmatprep.mubr.msk.bf16.mxu0 %vm320_vm0, %v278_v41 }
  0xe0   : > { %v295_v42 = vpop.trf.xlu1 }
  0xe1   : > { %v279_v43 = vpop.trf.xlu0  ;;  %772 = vmatmul.mubr.msk.bf16.gmra.mrb[12].mxu1 %vm320_vm0, %v295_v42 }
  0xe2   : > { %756 = vmatmul.mubr.msk.bf16.gmra.mrb[12].mxu0 %vm320_vm0, %v279_v43 }
 0x19c   : > { %v761_v45 = vpop.f32.mrb[0].mxu1 }
 0x19d   : > { %v745_v46 = vpop.f32.mrb[0].mxu0  ;;  %v476_v47 = vadd.f32 %v761_v45, %v1244_v44  ;;  %v467_v48 = vpop.f32.mrb[1].mxu1 }
 0x19e   : > { %v412_v49 = vadd.f32 %v745_v46, %v1244_v44  ;;  %v403_v50 = vpop.f32.mrb[1].mxu0  ;;  %v468_v51 = vadd.f32 %v1244_v44, %v467_v48  ;;  %v762_v52 = vpop.f32.mrb[2].mxu1 }
 0x19f   : > { %548 = vst [vmem:[%s1249_s9 + $0x90] sm:$0xff] %v476_v47  ;;  %v404_v53 = vadd.f32 %v1244_v44, %v403_v50  ;;  %v746_v54 = vpop.f32.mrb[2].mxu0  ;;  %v479_v55 = vadd.f32 %v762_v52, %v1244_v44  ;;  %v470_v56 = vpop.f32.mrb[3].mxu1 }
 0x1a0   : > { %532 = vst [vmem:[%s1249_s9 + $0x10] sm:$0xff] %v412_v49  ;;  %546 = vst [vmem:[%s1249_s9 + $0x80] sm:$0xff] %v468_v51  ;;  %v415_v57 = vadd.f32 %v746_v54, %v1244_v44  ;;  %v406_v58 = vpop.f32.mrb[3].mxu0  ;;  %v471_v59 = vadd.f32 %v1244_v44, %v470_v56 }
 0x1a1   : > { %530 = vst [vmem:[%s1249_s9] sm:$0xff] %v404_v53  ;;  %549 = vst [vmem:[%s1249_s9 + $0x98] sm:$0xff] %v479_v55  ;;  %v407_v60 = vadd.f32 %v1244_v44, %v406_v58 }
 0x1a2   : > { %533 = vst [vmem:[%s1249_s9 + $0x18] sm:$0xff] %v415_v57  ;;  %547 = vst [vmem:[%s1249_s9 + $0x88] sm:$0xff] %v471_v59 }
 0x1a3   : > { %531 = vst [vmem:[%s1249_s9 + $0x8] sm:$0xff] %v407_v60 }
 0x1a4   : > { %v765_v61 = vpop.f32.mrb[4].mxu1 }
 0x1a5   : > { %v749_v62 = vpop.f32.mrb[4].mxu0  ;;  %v492_v63 = vadd.f32 %v765_v61, %v1244_v44  ;;  %v483_v0 = vpop.f32.mrb[5].mxu1 }
 0x1a6   : > { %v428_v1 = vadd.f32 %v749_v62, %v1244_v44  ;;  %v419_v2 = vpop.f32.mrb[5].mxu0  ;;  %v484_v3 = vadd.f32 %v1244_v44, %v483_v0  ;;  %v766_v4 = vpop.f32.mrb[6].mxu1 }
 0x1a7   : > { %552 = vst [vmem:[%s1249_s9 + $0xb0] sm:$0xff] %v492_v63  ;;  %v420_v5 = vadd.f32 %v1244_v44, %v419_v2  ;;  %v750_v6 = vpop.f32.mrb[6].mxu0  ;;  %v495_v7 = vadd.f32 %v766_v4, %v1244_v44  ;;  %v486_v8 = vpop.f32.mrb[7].mxu1 }
 0x1a8   : > { %536 = vst [vmem:[%s1249_s9 + $0x30] sm:$0xff] %v428_v1  ;;  %550 = vst [vmem:[%s1249_s9 + $0xa0] sm:$0xff] %v484_v3  ;;  %v431_v9 = vadd.f32 %v750_v6, %v1244_v44  ;;  %v422_v10 = vpop.f32.mrb[7].mxu0  ;;  %v487_v11 = vadd.f32 %v1244_v44, %v486_v8 }
 0x1a9   : > { %534 = vst [vmem:[%s1249_s9 + $0x20] sm:$0xff] %v420_v5  ;;  %553 = vst [vmem:[%s1249_s9 + $0xb8] sm:$0xff] %v495_v7  ;;  %v423_v12 = vadd.f32 %v1244_v44, %v422_v10 }
 0x1aa   : > { %537 = vst [vmem:[%s1249_s9 + $0x38] sm:$0xff] %v431_v9  ;;  %551 = vst [vmem:[%s1249_s9 + $0xa8] sm:$0xff] %v487_v11 }
 0x1ab   : > { %535 = vst [vmem:[%s1249_s9 + $0x28] sm:$0xff] %v423_v12 }
 0x1ac   : > { %v769_v13 = vpop.f32.mrb[8].mxu1 }
 0x1ad   : > { %v753_v14 = vpop.f32.mrb[8].mxu0  ;;  %v508_v15 = vadd.f32 %v769_v13, %v1244_v44  ;;  %v499_v16 = vpop.f32.mrb[9].mxu1 }
 0x1ae   : > { %v444_v17 = vadd.f32 %v753_v14, %v1244_v44  ;;  %v435_v18 = vpop.f32.mrb[9].mxu0  ;;  %v500_v19 = vadd.f32 %v1244_v44, %v499_v16  ;;  %v770_v20 = vpop.f32.mrb[10].mxu1 }
 0x1af   : > { %556 = vst [vmem:[%s1249_s9 + $0xd0] sm:$0xff] %v508_v15  ;;  %v436_v21 = vadd.f32 %v1244_v44, %v435_v18  ;;  %v754_v22 = vpop.f32.mrb[10].mxu0  ;;  %v511_v23 = vadd.f32 %v770_v20, %v1244_v44  ;;  %v502_v24 = vpop.f32.mrb[11].mxu1 }
 0x1b0   : > { %540 = vst [vmem:[%s1249_s9 + $0x50] sm:$0xff] %v444_v17  ;;  %554 = vst [vmem:[%s1249_s9 + $0xc0] sm:$0xff] %v500_v19  ;;  %v447_v25 = vadd.f32 %v754_v22, %v1244_v44  ;;  %v438_v26 = vpop.f32.mrb[11].mxu0  ;;  %v503_v27 = vadd.f32 %v1244_v44, %v502_v24 }
 0x1b1   : > { %538 = vst [vmem:[%s1249_s9 + $0x40] sm:$0xff] %v436_v21  ;;  %557 = vst [vmem:[%s1249_s9 + $0xd8] sm:$0xff] %v511_v23  ;;  %v439_v28 = vadd.f32 %v1244_v44, %v438_v26 }
 0x1b2   : > { %541 = vst [vmem:[%s1249_s9 + $0x58] sm:$0xff] %v447_v25  ;;  %555 = vst [vmem:[%s1249_s9 + $0xc8] sm:$0xff] %v503_v27 }
 0x1b3   : > { %539 = vst [vmem:[%s1249_s9 + $0x48] sm:$0xff] %v439_v28 }
 0x1b4   : > { %v773_v29 = vpop.f32.mrb[12].mxu1 }
 0x1b5   : > { %v757_v30 = vpop.f32.mrb[12].mxu0  ;;  %v524_v31 = vadd.f32 %v773_v29, %v1244_v44  ;;  %v515_v32 = vpop.f32.mrb[13].mxu1 }
 0x1b6   : > { %v460_v33 = vadd.f32 %v757_v30, %v1244_v44  ;;  %v451_v34 = vpop.f32.mrb[13].mxu0  ;;  %v516_v35 = vadd.f32 %v1244_v44, %v515_v32  ;;  %v774_v36 = vpop.f32.mrb[14].mxu1 }
 0x1b7   : > { %560 = vst [vmem:[%s1249_s9 + $0xf0] sm:$0xff] %v524_v31  ;;  %v452_v37 = vadd.f32 %v1244_v44, %v451_v34  ;;  %v758_v38 = vpop.f32.mrb[14].mxu0  ;;  %v527_v39 = vadd.f32 %v774_v36, %v1244_v44  ;;  %v518_v40 = vpop.f32.mrb[15].mxu1 }
 0x1b8   : > { %544 = vst [vmem:[%s1249_s9 + $0x70] sm:$0xff] %v460_v33  ;;  %558 = vst [vmem:[%s1249_s9 + $0xe0] sm:$0xff] %v516_v35  ;;  %v463_v41 = vadd.f32 %v758_v38, %v1244_v44  ;;  %v454_v42 = vpop.f32.mrb[15].mxu0  ;;  %v519_v43 = vadd.f32 %v1244_v44, %v518_v40 }
 0x1b9   : > { %542 = vst [vmem:[%s1249_s9 + $0x60] sm:$0xff] %v452_v37  ;;  %561 = vst [vmem:[%s1249_s9 + $0xf8] sm:$0xff] %v527_v39  ;;  %v455_v45 = vadd.f32 %v1244_v44, %v454_v42 }
 0x1ba   : > { %545 = vst [vmem:[%s1249_s9 + $0x78] sm:$0xff] %v463_v41  ;;  %559 = vst [vmem:[%s1249_s9 + $0xe8] sm:$0xff] %v519_v43 }
 0x1bb   : > { %543 = vst [vmem:[%s1249_s9 + $0x68] sm:$0xff] %v455_v45 }
 0x1bc   : > { %938 = shalt.err (!%p935_p5)
}
 0x1bd   : > { %s939_s29 = scalar_lea.hbm %s1311_s26, 4096  ;;  %s943_s20 = scalar_lea.hbm %s1371_s3, 8192 }
 0x1be   : > { %p940_p9 = scmp.ne.s32.totalorder %s1311_s26, %s939_s29  ;;  %p944_p3 = scmp.lt.u32.totalorder %s1311_s26, %s1371_s3 }
 0x1bf   : > { %p945_p7 = scmp.lt.u32.totalorder %s943_s20, %s939_s29  ;;  %p947_p4 = scmp.lt.u32.totalorder %s939_s29, %s1311_s26 }
 0x1c0   : > { %p941_p1 = pnand %p940_p9, %p1138_p10 }
 0x1c1   : > { %p946_p13 = por %p945_p7, %p944_p3 }
 0x1c2   : > { %p942_p2 = pneg %p941_p1 }
 0x1c3   : > { %p948_p6 = por %p947_p4, %p946_p13 }
 0x1c5   : > { %p949_p8 = pnand %p948_p6, %p942_p2 }
 0x1c7   : > { %952 = shalt.err (!%p949_p8)
}
 0x1c8   : > { %s1020_s9 = smov 128   ;;  %s1021_s10 = smov 8  }
 0x1c9   : > { %789 = dma.vmem_to_hbm [thread:$0]  (%p1138_p10), %s1313_s11, 4096, %s1311_s26, %s563_s7, %s1020_s9, %s1020_s9, %s1021_s10  }
 0x1ca PF: > { %s593_s15 = sand.u32 1, %s991_s12   ;;  %p1389_p12 = scmp.ne.s32.totalorder %s1379_s23, 0 }
 0x1cb   : > { %p1390_p11 = scmp.ge.s32.totalorder %s1011_s17, 2  ;;  %s594_s18 = scalar_lea.sflag [#allocation4], %s593_s15 }
 0x1cd   : > { %p800_p0 = pnand %p1390_p11, %p1389_p12 }
 0x1cf   : > { %986 = dma.done.wait (!%p800_p0), %s594_s18, 4096  }
 0x1d0   : > { %988 = vsyncadd (!%p800_p0), %s594_s18, 4294963200  ;;  %s20_s17 = sadd.s32 1, %s1011_s17   ;;  %s1391_s12 = smov %s995_s13 }
 0x1d1   : > { %p17_p5 = scmp.ge.s32.totalorder %s20_s17, 4   ;;  %s1392_s13 = smov %s999_s14 }
 0x1d2   : > { %s1393_s14 = smov %s1147_s5  ;;  %s1394_s15 = smov %s1007_s16 }
 0x1d3   : > { %s1395_s16 = smov %s1397_s28  ;;  %19 = sbr.rel (!%p17_p5) target bundleno = 7 (0x7), region = 81 }
 0x1da   :  { %599 = vsyncpa [#allocation3], 1 }
 0x1db   :  { %601 = vsyncpa [#allocation3 + $0x1], 1 }
 0x1dc   :  { %602 = vsyncpa [#allocation6], 1 }
 0x1dd   :  { %603 = vsyncpa [#allocation4], 1 }
 0x1de   :  { %605 = vsyncpa [#allocation4 + $0x1], 1 }

</bundles_post_ra>
